<compile_context>
chip_gen: v7x
topology: tpu7x:2x2x1
jax: 0.10.0
libtpu: 0.0.40
codegen_flags: <defaults>
</compile_context>

<pallas_src>
import numpy as np

import jax
import jax.numpy as jnp
from jax import lax
from jax.experimental import pallas as pl
from jax.experimental.pallas import tpu as pltpu

K = 7
PAD = (K - 1) // 2  # 3


# ----------------------------------------------------------------------------
# Kernel
# ----------------------------------------------------------------------------
def _spatial_gate_kernel(x_ref, cm_ref, b_ref, o_ref):
    # x_ref : (BN, C, HW)    input block, native dtype, lane-dense trailing dim
    # cm_ref: (2, 2*HW, HW)  bf16 (hi, lo) split of the f32 unrolled-conv matrix
    # b_ref : (1,)           SMEM folded conv+BN bias (f32)
    # o_ref : (BN, C, HW)    output block
    x = x_ref[...]
    C = x.shape[1]

    # Channel pooling.  max is exact in the native dtype (bf16-safe); the mean
    # accumulates in f32 without materializing an f32 copy of the whole block.
    p_max = jnp.max(x, axis=1).astype(jnp.float32)               # (BN, HW)
    p_mean = jnp.sum(x, axis=1, dtype=jnp.float32) * (1.0 / C)   # (BN, HW)
    pooled = jnp.concatenate([p_max, p_mean], axis=-1)           # (BN, 2*HW) f32

    # 7x7 conv + folded BN as one MXU contraction against the resident
    # unrolled-conv matrix.  bf16 hi/lo split + 3 passes with f32 accumulation
    # reproduces the f32 contraction to ~2^-17 relative error.
    p_hi = pooled.astype(jnp.bfloat16)
    p_lo = (pooled - p_hi.astype(jnp.float32)).astype(jnp.bfloat16)
    cm_hi = cm_ref[0]                                            # (2*HW, HW) bf16
    cm_lo = cm_ref[1]
    acc = (jnp.dot(p_hi, cm_hi, preferred_element_type=jnp.float32)
           + jnp.dot(p_hi, cm_lo, preferred_element_type=jnp.float32)
           + jnp.dot(p_lo, cm_hi, preferred_element_type=jnp.float32)
           + b_ref[0])                                           # (BN, HW) f32

    scale = jax.nn.sigmoid(acc)                                  # EUP logistic

    # Gate in the native dtype (bf16 multiply on v6e/v7x; f32 inputs stay f32).
    o_ref[...] = (x * scale.astype(x.dtype)[:, None, :]).astype(o_ref.dtype)


# ----------------------------------------------------------------------------
# Wrapper helpers
# ----------------------------------------------------------------------------
def _vmem_capacity_bytes():
    """Per-core VMEM capacity, with a conservative fallback (v7x = 64 MiB)."""
    try:
        info = pltpu.get_tpu_info()
        cap = getattr(info, "vmem_capacity_bytes", None)
        if cap:
            return int(cap)
    except Exception:
        pass
    return 64 << 20


def _conv_unroll_indices(H, W):
    """Static scatter indices for the (2*HW, HW) unrolled 7x7-conv matrix.

    conv_mat[rows[t], cols[t]] += w_flat[taps[t]],  w_flat layout = [c, ky, kx].
    Row index = c*HW + (input flat pos), col index = output flat pos; the zero
    padding of the conv is encoded by simply omitting out-of-range taps.
    """
    HW = H * W
    io, jo = np.meshgrid(np.arange(H), np.arange(W), indexing="ij")
    po = (io * W + jo).ravel()
    rows, cols, taps = [], [], []
    for c in range(2):
        for ky in range(K):
            for kx in range(K):
                ii = (io + ky - PAD).ravel()
                ji = (jo + kx - PAD).ravel()
                ok = (ii >= 0) & (ii < H) & (ji >= 0) & (ji < W)
                rows.append(c * HW + ii[ok] * W + ji[ok])
                cols.append(po[ok])
                taps.append(np.full(int(ok.sum()), (c * K + ky) * K + kx))
    return (np.concatenate(rows).astype(np.int32),
            np.concatenate(cols).astype(np.int32),
            np.concatenate(taps).astype(np.int32))


def _pick_batch_block(N, C, HW, itemsize, vmem_budget_bytes):
    # Resident (hi, lo) conv matrix, assume double-buffered slots.
    cm_bytes = 2 * 2 * (2 * HW) * HW * 2
    # Per batch row: double-buffered in/out blocks + f32 widening of the gate
    # multiply + the C-independent pooled/acc/scale temporaries (review fix).
    per_row = 2 * 2 * C * HW * itemsize      # x block + out block, 2 buffers each
    per_row += 4 * C * HW                    # f32 working set of the gating multiply
    per_row += 12 * (2 * HW) * 4             # pooled / hi / lo / acc / scale temps
    avail = max(vmem_budget_bytes - cm_bytes, per_row)
    bn = max(1, min(N, avail // per_row))
    # >= 4 grid steps whenever N allows: >= 2 per v7x TensorCore so the input
    # DMA / output writeback stay pipelined (review fix for the ceil(N/2) clamp).
    bn = min(bn, max(1, -(-N // 4)))
    return int(bn)


# ----------------------------------------------------------------------------
# Public entry point
# ----------------------------------------------------------------------------
def spatial_gate(x, conv_w, gamma, beta, run_mean, run_var, eps=1e-5):
    """x: (N, C, H, W). conv_w: (1, 2, 7, 7). BN params: shape (1,)."""
    N, C, H, W = x.shape
    HW = H * W

    # Fold eval-mode BatchNorm into the conv weight / bias (conv has no bias):
    #   y = gamma * (conv(p) - mean) / sqrt(var + eps) + beta
    inv = (gamma / jnp.sqrt(run_var + eps)).astype(jnp.float32)      # (1,)
    b_folded = (beta - run_mean * inv).astype(jnp.float32)           # (1,)
    w_flat = (conv_w.astype(jnp.float32) * inv[0]).reshape(-1)       # (2*K*K,)

    # Exact f32 unrolled-conv (Toeplitz) matrix: pooled_flat @ conv_mat == conv.
    rows, cols, taps = _conv_unroll_indices(H, W)
    conv_mat = jnp.zeros((2 * HW, HW), jnp.float32).at[rows, cols].add(w_flat[taps])

    # bf16 (hi, lo) split: hi + lo reconstructs the f32 matrix to ~2^-17
    # relative, so the 3-pass bf16 contraction in the kernel is f32-accurate.
    cm_hi = conv_mat.astype(jnp.bfloat16)
    cm_lo = (conv_mat - cm_hi.astype(jnp.float32)).astype(jnp.bfloat16)
    cm = jnp.stack([cm_hi, cm_lo])                                   # (2, 2*HW, HW)

    # Lane-dense view: trailing dim becomes H*W (256 here — multiple of 128).
    x_flat = x.reshape(N, C, HW)

    # Generation-aware VMEM sizing (v7x: 64 MiB/core, v5e/v6e: 128 MiB).
    cap = _vmem_capacity_bytes()
    vmem_limit = int(max(32 << 20, min(cap - (12 << 20), int(cap * 0.8))))
    budget = max(16 << 20, vmem_limit - (8 << 20))

    bn = _pick_batch_block(N, C, HW, x.dtype.itemsize, budget)
    grid = (pl.cdiv(N, bn),)

    out_flat = pl.pallas_call(
        _spatial_gate_kernel,
        out_shape=jax.ShapeDtypeStruct((N, C, HW), x.dtype),
        grid_spec=pltpu.PrefetchScalarGridSpec(
            num_scalar_prefetch=0,
            grid=grid,
            in_specs=[
                pl.BlockSpec((bn, C, HW), lambda n: (n, 0, 0)),
                # Constant index_map -> resident across grid steps (no re-DMA).
                pl.BlockSpec((2, 2 * HW, HW), lambda n: (0, 0, 0)),
                pl.BlockSpec(memory_space=pltpu.MemorySpace.SMEM),
            ],
            out_specs=pl.BlockSpec((bn, C, HW), lambda n: (n, 0, 0)),
        ),
        compiler_params=pltpu.CompilerParams(
            dimension_semantics=("parallel",),
            vmem_limit_bytes=vmem_limit,
        ),
    )(x_flat, cm, b_folded)

    return out_flat.reshape(N, C, H, W)


# ----------------------------------------------------------------------------
# Pure-JAX reference (mirrors the PyTorch forward in eval mode)
# ----------------------------------------------------------------------------
def spatial_gate_ref(x, conv_w, gamma, beta, run_mean, run_var, eps=1e-5):
    x_max = jnp.max(x, axis=1, keepdims=True)
    x_mean = jnp.mean(x, axis=1, keepdims=True)
    pooled = jnp.concatenate([x_max, x_mean], axis=1)          # (N, 2, H, W)
    y = lax.conv_general_dilated(
        pooled, conv_w, window_strides=(1, 1),
        padding=((PAD, PAD), (PAD, PAD)),
        dimension_numbers=("NCHW", "OIHW", "NCHW"))
    inv = gamma / jnp.sqrt(run_var + eps)
    y = y * inv[None, :, None, None] + (beta - run_mean * inv)[None, :, None, None]
    return x * jax.nn.sigmoid(y)


if __name__ == "__main__":
    key = jax.random.PRNGKey(0)
    k_x, k_w, k_g, k_b, k_m, k_v = jax.random.split(key, 6)

    N, C, H, W = 2, 4, 16, 16
    x = jax.random.normal(k_x, (N, C, H, W), dtype=jnp.float32)

    # Deterministic synthetic parameters (shapes per SpatialGate.__init__):
    #   Conv2d(2, 1, 7, padding=3, bias=False) -> weight (1, 2, 7, 7)
    #   BatchNorm2d(1, eps=1e-5, affine=True)  -> gamma/beta/mean/var (1,)
    conv_w = jax.random.normal(k_w, (1, 2, K, K), dtype=jnp.float32) * 0.1
    gamma = 1.0 + 0.1 * jax.random.normal(k_g, (1,), dtype=jnp.float32)
    beta = 0.1 * jax.random.normal(k_b, (1,), dtype=jnp.float32)
    run_mean = 0.1 * jax.random.normal(k_m, (1,), dtype=jnp.float32)
    run_var = jnp.abs(1.0 + 0.1 * jax.random.normal(k_v, (1,), dtype=jnp.float32))

    out = spatial_gate(x, conv_w, gamma, beta, run_mean, run_var)
    out = jax.block_until_ready(out)

    ref = spatial_gate_ref(x, conv_w, gamma, beta, run_mean, run_var)
    assert out.shape == x.shape and out.dtype == x.dtype
    assert jnp.allclose(out, ref, atol=1e-4, rtol=1e-4), "mismatch vs JAX reference"

    print("KERNEL_OK")
</pallas_src>

<mosaic_0001>
module attributes {stable_mosaic.version = 11 : i64} {
  func.func @_spatial_gate_kernel(%arg0: i32, %arg1: memref<1x4x256xf32, #tpu.memory_space<vmem>>, %arg2: memref<2x512x256xbf16, #tpu.memory_space<vmem>>, %arg3: memref<1xf32, #tpu.memory_space<smem>>, %arg4: memref<1x4x256xf32, #tpu.memory_space<vmem>>) attributes {dimension_semantics = [#tpu.dimension_semantics<parallel>], iteration_bounds = array<i64: 2>, scalar_prefetch = 0 : i64, scratch_operands = 0 : i64, tpu.core_type = #tpu.core_type<tc>, window_params = [{transform_indices = @transform_0, window_bounds = array<i64: 1, 4, 256>}, {pipeline_mode = #tpu.pipeline_mode<synchronous>, transform_indices = @transform_1, window_bounds = array<i64: 2, 512, 256>}, {transform_indices = @transform_2, window_bounds = array<i64: 1>}, {transform_indices = @transform_3, window_bounds = array<i64: 1, 4, 256>}]} {
    %c0 = arith.constant 0 : index
    %c0_0 = arith.constant 0 : index
    %c0_1 = arith.constant 0 : index
    %0 = vector.load %arg1[%c0, %c0_0, %c0_1] : memref<1x4x256xf32, #tpu.memory_space<vmem>>, vector<1x4x256xf32>
    %cst = arith.constant dense<0xFF800000> : vector<1x256xf32>
    %1 = vector.multi_reduction <maximumf>, %0, %cst [1] : vector<1x4x256xf32> to vector<1x256xf32>
    %cst_2 = arith.constant dense<0.000000e+00> : vector<1x256xf32>
    %2 = vector.multi_reduction <add>, %0, %cst_2 [1] : vector<1x4x256xf32> to vector<1x256xf32>
    %cst_3 = arith.constant 2.500000e-01 : f32
    %3 = vector.broadcast %cst_3 : f32 to vector<1x256xf32>
    %4 = arith.mulf %2, %3 : vector<1x256xf32>
    %5 = tpu.concatenate %1, %4 in 1 : vector<1x256xf32>, vector<1x256xf32> -> vector<1x512xf32>
    %6 = arith.truncf %5 : vector<1x512xf32> to vector<1x512xbf16>
    %7 = arith.extf %6 : vector<1x512xbf16> to vector<1x512xf32>
    %8 = arith.subf %5, %7 : vector<1x512xf32>
    %9 = arith.truncf %8 : vector<1x512xf32> to vector<1x512xbf16>
    %c0_4 = arith.constant 0 : index
    %c0_5 = arith.constant 0 : index
    %c0_6 = arith.constant 0 : index
    %10 = vector.load %arg2[%c0_4, %c0_5, %c0_6] : memref<2x512x256xbf16, #tpu.memory_space<vmem>>, vector<1x512x256xbf16>
    %11 = vector.shape_cast %10 : vector<1x512x256xbf16> to vector<512x256xbf16>
    %c1 = arith.constant 1 : index
    %c0_7 = arith.constant 0 : index
    %c0_8 = arith.constant 0 : index
    %12 = vector.load %arg2[%c1, %c0_7, %c0_8] : memref<2x512x256xbf16, #tpu.memory_space<vmem>>, vector<1x512x256xbf16>
    %13 = vector.shape_cast %12 : vector<1x512x256xbf16> to vector<512x256xbf16>
    %cst_9 = arith.constant dense<0.000000e+00> : vector<1x256xf32>
    %14 = tpu.matmul %6, %11, %cst_9 {dimension_numbers = #tpu.dot_dimension_numbers<[1], [0], [0], [1], [0, 0, 1, 1], [], []>} : vector<1x512xbf16>, vector<512x256xbf16>, vector<1x256xf32> -> vector<1x256xf32>
    %cst_10 = arith.constant dense<0.000000e+00> : vector<1x256xf32>
    %15 = tpu.matmul %6, %13, %cst_10 {dimension_numbers = #tpu.dot_dimension_numbers<[1], [0], [0], [1], [0, 0, 1, 1], [], []>} : vector<1x512xbf16>, vector<512x256xbf16>, vector<1x256xf32> -> vector<1x256xf32>
    %16 = arith.addf %14, %15 : vector<1x256xf32>
    %cst_11 = arith.constant dense<0.000000e+00> : vector<1x256xf32>
    %17 = tpu.matmul %9, %11, %cst_11 {dimension_numbers = #tpu.dot_dimension_numbers<[1], [0], [0], [1], [0, 0, 1, 1], [], []>} : vector<1x512xbf16>, vector<512x256xbf16>, vector<1x256xf32> -> vector<1x256xf32>
    %18 = arith.addf %16, %17 : vector<1x256xf32>
    %c0_12 = arith.constant 0 : index
    %19 = memref.load %arg3[%c0_12] : memref<1xf32, #tpu.memory_space<smem>>
    %20 = vector.broadcast %19 : f32 to vector<1x256xf32>
    %21 = arith.addf %18, %20 : vector<1x256xf32>
    %22 = arith.negf %21 : vector<1x256xf32>
    %23 = math.exp %22 : vector<1x256xf32>
    %cst_13 = arith.constant 1.000000e+00 : f32
    %24 = vector.broadcast %cst_13 : f32 to vector<1x256xf32>
    %25 = arith.addf %24, %23 : vector<1x256xf32>
    %26 = arith.divf %24, %25 : vector<1x256xf32>
    %27 = vector.shape_cast %26 : vector<1x256xf32> to vector<1x1x256xf32>
    %28 = vector.broadcast %27 : vector<1x1x256xf32> to vector<1x4x256xf32>
    %29 = arith.mulf %0, %28 : vector<1x4x256xf32>
    %c0_14 = arith.constant 0 : index
    %c0_15 = arith.constant 0 : index
    %c0_16 = arith.constant 0 : index
    %30 = vector.load %arg4[%c0_14, %c0_15, %c0_16] : memref<1x4x256xf32, #tpu.memory_space<vmem>>, vector<1x4x256xf32>
    tpu.vector_store %arg4[%c0_14, %c0_15, %c0_16], %29 {strides = array<i32>} : memref<1x4x256xf32, #tpu.memory_space<vmem>>, vector<1x4x256xf32>,
    return
  }
  func.func @transform_0(%arg0: i32) -> (i32, i32, i32) {
    %c0_i32 = arith.constant 0 : i32
    %c0_i32_0 = arith.constant 0 : i32
    %c0_i32_1 = arith.constant 0 : i32
    return %arg0, %c0_i32, %c0_i32_0 : i32, i32, i32
  }
  func.func @transform_1(%arg0: i32) -> (i32, i32, i32) {
    %c0_i32 = arith.constant 0 : i32
    %c0_i32_0 = arith.constant 0 : i32
    %c0_i32_1 = arith.constant 0 : i32
    %c0_i32_2 = arith.constant 0 : i32
    return %c0_i32, %c0_i32_0, %c0_i32_1 : i32, i32, i32
  }
  func.func @transform_2(%arg0: i32) -> i32 {
    %c0_i32 = arith.constant 0 : i32
    %c0_i32_0 = arith.constant 0 : i32
    return %c0_i32 : i32
  }
  func.func @transform_3(%arg0: i32) -> (i32, i32, i32) {
    %c0_i32 = arith.constant 0 : i32
    %c0_i32_0 = arith.constant 0 : i32
    %c0_i32_1 = arith.constant 0 : i32
    return %arg0, %c0_i32, %c0_i32_0 : i32, i32, i32
  }
}

</mosaic_0001>

<bundles_post_ra>
// kernel: tpu_custom_call.1
= control target key start
LH: loop header
LB: loop body
LE: loop exit
PB: predicated region body
PF: predicated region fallthrough
CT: control target
= control target key end

     0   :  { %s2460_s0 = inlined_call_operand.hbm [shape: f32[2,4,256], index: 0, kind: input, shape index: {}]   ;;  %s2461_s1 = inlined_call_operand.hbm [shape: bf16[2,512,256], index: 1, kind: input, shape index: {}]   ;;  %s2462_s2 = inlined_call_operand.<no memory space> [shape: f32[1], index: 2, kind: input, shape index: {}]   ;;  %s2463_s3 = inlined_call_operand.hbm [shape: f32[2,4,256], index: 3, kind: output, shape index: {}]  }
   0x1   :  { %8 = sst [smem:[#allocation2]] %s2462_s2 }
   0x2   :  { %9 = vsyncpa [#allocation4], 0 }
   0x3   :  { %11 = vsyncpa [#allocation4 + $0x1], 0 }
   0x4   :  { %12 = vsyncpa [#allocation7], 0 }
   0x5   :  { %13 = vsyncpa [#allocation5], 0 }
   0x6   :  { %15 = vsyncpa [#allocation5 + $0x1], 0  ;;  %s1962_s14 = smov 0   ;;  %s1964_s15 = smov 0  }
   0x7   :  { %s1966_s16 = smov 0   ;;  %s1968_s17 = smov 0  }
   0x8 LB: > { %s1983_s2 = sadd.s32 4294967295, %s1932_s17   ;;  %s1396_s18 = sadd.s32 4294967294, %s1932_s17   ;;  %s1932_s17 = sphi %s1968_s17, %s2510_s17   ;;  %s1928_s16 = sphi %s1966_s16, %s2509_s16   ;;  %s1924_s15 = sphi %s1964_s15, %s2508_s15   ;;  %s1920_s14 = sphi %s1962_s14, %s2507_s14  }
   0x9   : > { %p41_p0 = scmp.ne.s32.totalorder %s1924_s15, %s1920_s14  ;;  %p2464_p1 = scmp.eq.s32.totalorder %s1983_s2, 0 }
   0xa   : > { %p113_p3 = scmp.eq.s32.totalorder %s1396_s18, 1  ;;  %p1397_p5 = scmp.ge.s32.totalorder %s1932_s17, 1 }
   0xb   : > { %p1992_p4 = por %p2464_p1, %p41_p0  ;;  %p120_p7 = scmp.lt.s32.totalorder %s1932_s17, 3 }
   0xc   : > { %p1997_p6 = por %p113_p3, %p41_p0  ;;  %s1934_s22 = smov [#allocation6]  }
   0xd   : > { %s2476_s19 = scalar_select %p1992_p4, 1, 0 }
   0xe   : > { %s2477_s20 = scalar_select %p1997_p6, 1, 0 }
   0xf   : > { %p2002_p8 = pnand %p1397_p5, %p120_p7  ;;  %s132_s23 = sshll.u32 %s1934_s22, 4  ;;  %s2006_s23 = int_to_ptr.vmem [resolvable:$true] %s132_s23 }
  0x10   : > { %s2018_s25 = sadd.s32 1, %s1932_s17   ;;  %s28_s26 = sadd.s32 1, %s1928_s16 }
  0x11   : > { %s2478_s21 = scalar_select %p2002_p8, 1, 0 }
  0x12   : > { %p1552_p9 = pneg %p2002_p8  ;;  %s25_s27 = ssub.s32 %s1932_s17, %s2018_s25 }
  0x13   : > { %s1804_s30 = scalar_lea.hbm %s2461_s1, 16384 }
  0x14   : > { %p2013_p11 = pnand %p1552_p9, %p2464_p1  ;;  %p1805_p12 = scmp.ne.s32.totalorder %s2461_s1, %s1804_s30 }
  0x15   : > { %p1811_p5 = scmp.lt.u32.totalorder %s1804_s30, %s2461_s1 }
  0x16   : > { %p1806_p13 = pneg %p2013_p11 }
  0x18   : > { %p1807_p0 = pnand %p1806_p13, %p1805_p12 }
  0x1a   : > { %p1808_p3 = pneg %p1807_p0 }
  0x1c   : > { %p1813_p7 = pnand %p1811_p5, %p1808_p3 }
  0x1e   : > { %1816 = shalt.err (!%p1813_p7)
}
  0x1f   : > { %s1817_s8 = scalar_lea.vmem %s2006_s23, 16384  ;;  %p1825_p2 = scmp.lt.s32.totalorder %s2006_s23, %s2006_s23 }
  0x20   : > { %p1818_p9 = scmp.ne.s32.totalorder %s2006_s23, %s1817_s8  ;;  %p1826_p6 = scmp.lt.s32.totalorder %s1817_s8, %s1817_s8 }
  0x22   : > { %p1820_p10 = pnand %p1818_p9, %p1806_p13  ;;  %p1827_p4 = por %p1826_p6, %p1825_p2 }
  0x24   : > { %p1821_p1 = pneg %p1820_p10 }
  0x26   : > { %p1828_p8 = pnand %p1827_p4, %p1821_p1 }
  0x28   : > { %1831 = shalt.err (!%p1828_p8)
}
  0x29   : > { %s1935_s9 = smov 128   ;;  %s1936_s10 = smov 8  }
  0x2a   : > { %1555 = dma.hbm_to_vmem [thread:$0]  (!%p2013_p11), %s2461_s1, 16384, %s2006_s23, [#allocation7], %s1935_s9, %s1935_s9, %s1936_s10  }
  0x2b   : > { %p26_p2 = scmp.eq.s32.totalorder %s25_s27, 0  ;;  %p35_p1 = scmp.ne.s32.totalorder %s1928_s16, %s1924_s15 }
  0x2c   : > { %p36_p4 = scmp.eq.s32.totalorder %s1932_s17, 0  ;;  %p1565_p6 = scmp.lt.s32.totalorder %s1932_s17, 2 }
  0x2d   : > { %s2049_s13 = scalar_select %p26_p2, %s1928_s16, %s28_s26  }
  0x2e   : > { %p37_p8 = por %p36_p4, %p35_p1  ;;  %p2480_p10 = scmp.eq.s32.totalorder %s1983_s2, 1 }
  0x2f   : > { %s149_s22 = sand.u32 1, %s1928_s16   ;;  %s1542_s28 = sshll.u32 %s1932_s17, 7 }
  0x30   : > { %p2053_p12 = por %p2480_p10, %p35_p1  ;;  %s1400_s29 = sshll.u32 %s149_s22, 3 }
  0x31   : > { %s2062_s4 = scalar_lea.hbm %s2460_s0, %s1542_s28  ;;  %s153_s23 = scalar_lea.vmem [#allocation3], %s1400_s29 }
  0x32   : > { %s161_s26 = sshll.u32 %s153_s23, 4  ;;  %p2064_p11 = pnand %p1565_p6, %p37_p8  ;;  %s2068_s26 = int_to_ptr.vmem [resolvable:$true] %s161_s26 }
  0x33   : > { %s150_s5 = scalar_lea.sflag [#allocation4], %s149_s22  ;;  %s1832_s6 = scalar_lea.hbm %s2062_s4, 128 }
  0x34   : > { %p1833_p13 = scmp.ne.s32.totalorder %s2062_s4, %s1832_s6  ;;  %p1834_p0 = pneg %p2064_p11 }
  0x35   : > { %s1837_s9 = scalar_lea.hbm %s2460_s0, 256  ;;  %p1838_p7 = scmp.lt.u32.totalorder %s2062_s4, %s2460_s0 }
  0x36   : > { %p1835_p3 = pnand %p1834_p0, %p1833_p13  ;;  %p1839_p9 = scmp.lt.u32.totalorder %s1837_s9, %s1832_s6 }
  0x37   : > { %p1841_p1 = scmp.lt.u32.totalorder %s1832_s6, %s2062_s4 }
  0x38   : > { %p1836_p5 = pneg %p1835_p3  ;;  %p1840_p2 = por %p1839_p9, %p1838_p7 }
  0x3a   : > { %p1842_p4 = por %p1841_p1, %p1840_p2 }
  0x3c   : > { %p1843_p6 = pnand %p1842_p4, %p1836_p5 }
  0x3e   : > { %1846 = shalt.err (!%p1843_p6)
}
  0x3f   : > { %s1847_s12 = scalar_lea.vmem %s2068_s26, 128  ;;  %s1937_s22 = smov [#allocation3]  }
  0x40   : > { %p1848_p8 = scmp.ne.s32.totalorder %s2068_s26, %s1847_s12  ;;  %s1852_s28 = sshll.u32 %s1937_s22, 4  ;;  %s1853_s28 = int_to_ptr.vmem [resolvable:$false] %s1852_s28 }
  0x41   : > { %s1854_s29 = scalar_lea.vmem %s1853_s28, 256  ;;  %p1855_p3 = scmp.lt.s32.totalorder %s2068_s26, %s1853_s28 }
  0x42   : > { %p1850_p10 = pnand %p1848_p8, %p1834_p0  ;;  %p1856_p7 = scmp.lt.s32.totalorder %s1854_s29, %s1847_s12 }
  0x44   : > { %p1851_p13 = pneg %p1850_p10  ;;  %p1857_p9 = por %p1856_p7, %p1855_p3 }
  0x46   : > { %p1858_p2 = pnand %p1857_p9, %p1851_p13 }
  0x48   : > { %1861 = shalt.err (!%p1858_p2)
}
  0x49   : > { %1559 = dma.hbm_to_vmem [thread:$0]  (!%p2064_p11), %s2062_s4, 128, %s2068_s26, %s150_s5  }
  0x4a   : > { %p2483_p5 = scmp.ne.s32.totalorder %s2478_s21, 0 }
  0x4c   : > { %170 = sbr.rel (%p2483_p5) target bundleno = 549 (0x225), region = 32 }
  0x53   : > { %s2098_s24 = sand.u32 1, %s1924_s15   ;;  %p2484_p0 = scmp.ne.s32.totalorder %s2476_s19, 0 }
  0x54   : > { %s1404_s30 = sshll.u32 %s2098_s24, 3  ;;  %s173_s23 = scalar_lea.sflag [#allocation4], %s2098_s24 }
  0x55   : > { %s2104_s6 = scalar_lea.vmem [#allocation3], %s1404_s30 }
  0x56   : > { %1907 = dma.done.wait (%p2484_p0), %s173_s23, 128  }
  0x57   : > { %1909 = vsyncadd (%p2484_p0), %s173_s23, 4294967168  ;;  %p2485_p11 = scmp.eq.s32.totalorder %s1983_s2, 0 }
  0x59   : > { %1911 = dma.done.wait (%p2485_p11), [#allocation7], 16384   ;;  %p2486_p1 = pmov %p2485_p11 }
  0x5a   : > { %v1603_v0 = vld [vmem:[#allocation6 + $0x204] ss:$8 sps:$4 sm:$0xff]   ;;  %v1607_v2 = vld [vmem:[#allocation6 + $0x200] ss:$8 sps:$4 sm:$0xff]   ;;  %v1609_v4 = vld [vmem:[#allocation6 + $0x214] ss:$8 sps:$4 sm:$0xff]  }
  0x5b   : > { %1913 = vsyncadd (%p2486_p1), [#allocation7], 4294950912  ;;  %v1605_v1 = vld [vmem:[#allocation6 + $0x304] ss:$8 sps:$4 sm:$0xff]   ;;  %703 = vmatprep.subr.bf16.mxu0 %v1603_v0  ;;  %v1608_v3 = vld [vmem:[#allocation6 + $0x300] ss:$8 sps:$4 sm:$0xff]  }
  0x5c   : > { %744 = vmatprep.subr.bf16.mxu1 %v1605_v1  ;;  %704 = vmatpush1.bf16.msra.mxu0 %v1607_v2  ;;  %v1611_v5 = vld [vmem:[#allocation6 + $0x314] ss:$8 sps:$4 sm:$0xff]   ;;  %v1613_v6 = vld [vmem:[#allocation6 + $0x210] ss:$8 sps:$4 sm:$0xff]   ;;  %v1615_v8 = vld [vmem:[#allocation6 + $0x224] ss:$8 sps:$4 sm:$0xff]  }
  0x5d   : > { %745 = vmatpush1.bf16.msra.mxu1 %v1608_v3  ;;  %705 = vmatprep.subr.bf16.mxu0 %v1609_v4  ;;  %v1614_v7 = vld [vmem:[#allocation6 + $0x310] ss:$8 sps:$4 sm:$0xff]   ;;  %v1617_v9 = vld [vmem:[#allocation6 + $0x324] ss:$8 sps:$4 sm:$0xff]   ;;  %v1619_v10 = vld [vmem:[#allocation6 + $0x220] ss:$8 sps:$4 sm:$0xff]  }
  0x5e   : > { %746 = vmatprep.subr.bf16.mxu1 %v1611_v5  ;;  %v1620_v11 = vld [vmem:[#allocation6 + $0x320] ss:$8 sps:$4 sm:$0xff]   ;;  %v1621_v12 = vld [vmem:[#allocation6 + $0x234] ss:$8 sps:$4 sm:$0xff]   ;;  %v1625_v14 = vld [vmem:[#allocation6 + $0x230] ss:$8 sps:$4 sm:$0xff]  }
  0x5f   : > { %v1623_v13 = vld [vmem:[#allocation6 + $0x334] ss:$8 sps:$4 sm:$0xff]   ;;  %v1626_v15 = vld [vmem:[#allocation6 + $0x330] ss:$8 sps:$4 sm:$0xff]   ;;  %v1627_v16 = vld [vmem:[#allocation6 + $0x244] ss:$8 sps:$4 sm:$0xff]  }
  0x60   : > { %706 = vmatpush1.bf16.msra.mxu0 %v1613_v6  ;;  %v1629_v17 = vld [vmem:[#allocation6 + $0x344] ss:$8 sps:$4 sm:$0xff]   ;;  %v1631_v18 = vld [vmem:[#allocation6 + $0x240] ss:$8 sps:$4 sm:$0xff]   ;;  %v1633_v20 = vld [vmem:[#allocation6 + $0x254] ss:$8 sps:$4 sm:$0xff]  }
  0x61   : > { %747 = vmatpush1.bf16.msra.mxu1 %v1614_v7  ;;  %707 = vmatprep.subr.bf16.mxu0 %v1615_v8  ;;  %v1632_v19 = vld [vmem:[#allocation6 + $0x340] ss:$8 sps:$4 sm:$0xff]   ;;  %v1635_v21 = vld [vmem:[#allocation6 + $0x354] ss:$8 sps:$4 sm:$0xff]   ;;  %v1637_v22 = vld [vmem:[#allocation6 + $0x250] ss:$8 sps:$4 sm:$0xff]  }
  0x62   : > { %748 = vmatprep.subr.bf16.mxu1 %v1617_v9  ;;  %v1638_v23 = vld [vmem:[#allocation6 + $0x350] ss:$8 sps:$4 sm:$0xff]   ;;  %v1639_v24 = vld [vmem:[#allocation6 + $0x264] ss:$8 sps:$4 sm:$0xff]   ;;  %v1643_v26 = vld [vmem:[#allocation6 + $0x260] ss:$8 sps:$4 sm:$0xff]  }
  0x63   : > { %v1641_v25 = vld [vmem:[#allocation6 + $0x364] ss:$8 sps:$4 sm:$0xff]   ;;  %v1644_v27 = vld [vmem:[#allocation6 + $0x360] ss:$8 sps:$4 sm:$0xff]   ;;  %v1645_v28 = vld [vmem:[#allocation6 + $0x274] ss:$8 sps:$4 sm:$0xff]  }
  0x64   : > { %708 = vmatpush1.bf16.msra.mxu0 %v1619_v10  ;;  %v1647_v29 = vld [vmem:[#allocation6 + $0x374] ss:$8 sps:$4 sm:$0xff]   ;;  %v1649_v30 = vld [vmem:[#allocation6 + $0x270] ss:$8 sps:$4 sm:$0xff]   ;;  %v1651_v32 = vld [vmem:[#allocation6 + $0x284] ss:$8 sps:$4 sm:$0xff]  }
  0x65   : > { %749 = vmatpush1.bf16.msra.mxu1 %v1620_v11  ;;  %709 = vmatprep.subr.bf16.mxu0 %v1621_v12  ;;  %v1650_v31 = vld [vmem:[#allocation6 + $0x370] ss:$8 sps:$4 sm:$0xff]   ;;  %v1653_v33 = vld [vmem:[#allocation6 + $0x384] ss:$8 sps:$4 sm:$0xff]   ;;  %v1655_v34 = vld [vmem:[#allocation6 + $0x280] ss:$8 sps:$4 sm:$0xff]  }
  0x66   : > { %750 = vmatprep.subr.bf16.mxu1 %v1623_v13  ;;  %v1656_v35 = vld [vmem:[#allocation6 + $0x380] ss:$8 sps:$4 sm:$0xff]   ;;  %v1657_v36 = vld [vmem:[#allocation6 + $0x294] ss:$8 sps:$4 sm:$0xff]   ;;  %v1661_v38 = vld [vmem:[#allocation6 + $0x290] ss:$8 sps:$4 sm:$0xff]  }
  0x67   : > { %v1659_v37 = vld [vmem:[#allocation6 + $0x394] ss:$8 sps:$4 sm:$0xff]   ;;  %v1662_v39 = vld [vmem:[#allocation6 + $0x390] ss:$8 sps:$4 sm:$0xff]   ;;  %v1663_v40 = vld [vmem:[#allocation6 + $0x2a4] ss:$8 sps:$4 sm:$0xff]  }
  0x68   : > { %710 = vmatpush1.bf16.msra.mxu0 %v1625_v14  ;;  %v1665_v41 = vld [vmem:[#allocation6 + $0x3a4] ss:$8 sps:$4 sm:$0xff]   ;;  %v1667_v42 = vld [vmem:[#allocation6 + $0x2a0] ss:$8 sps:$4 sm:$0xff]   ;;  %v1669_v44 = vld [vmem:[#allocation6 + $0x2b4] ss:$8 sps:$4 sm:$0xff]  }
  0x69   : > { %751 = vmatpush1.bf16.msra.mxu1 %v1626_v15  ;;  %711 = vmatprep.subr.bf16.mxu0 %v1627_v16  ;;  %v1668_v43 = vld [vmem:[#allocation6 + $0x3a0] ss:$8 sps:$4 sm:$0xff]   ;;  %vm207_vm0 = vcmask 1043456   ;;  %v1671_v45 = vld [vmem:[#allocation6 + $0x3b4] ss:$8 sps:$4 sm:$0xff]   ;;  %s1271_s19 = sld [smem:[#allocation2]] }
  0x6a   : > { %752 = vmatprep.subr.bf16.mxu1 %v1629_v17  ;;  %v2115_v46 = vld [vmem:[%s2104_s6] sm:$0xff]  ;;  %v1675_v54 = vld [vmem:[#allocation6 + $0x2c4] ss:$8 sps:$4 sm:$0xff]   ;;  %v1679_v62 = vld [vmem:[#allocation6 + $0x2c0] ss:$8 sps:$4 sm:$0xff]   ;;  %s1543_s21 = sshll.u32 %s1983_s2, 7 }
  0x6b   : > { %2487 = vst [vmem:[#allocation12_spill] sm:$0xff] %v2115_v46  ;;  %v1673_v47 = vld [vmem:[#allocation6 + $0x2b0] ss:$8 sps:$4 sm:$0xff]   ;;  %v205_v48 = vcombine.high %v2115_v46, %v2115_v46  ;;  %v208_v49 = vsel %vm207_vm0, %v2115_v46, -inf  ;;  %v222_v50 = vsel %vm207_vm0, %v2115_v46, 0.0  ;;  %s202_s4 = scalar_lea.vmem [#allocation8], %s1404_s30  ;;  %s2416_s7 = scalar_lea.hbm %s2463_s3, %s1543_s21 }
  0x6c   : > { %712 = vmatpush1.bf16.msra.mxu0 %v1631_v18  ;;  %v1674_v51 = vld [vmem:[#allocation6 + $0x3b0] ss:$8 sps:$4 sm:$0xff]   ;;  %v209_v52 = vrot.slane %v208_v49, 4  ;;  %v223_v53 = vrot.slane %v222_v50, 4  ;;  %v1677_v55 = vld [vmem:[#allocation6 + $0x3c4] ss:$8 sps:$4 sm:$0xff]  }
  0x6d   : > { %753 = vmatpush1.bf16.msra.mxu1 %v1632_v19  ;;  %713 = vmatprep.subr.bf16.mxu0 %v1633_v20  ;;  %v215_v56 = vsel %vm207_vm0, %v205_v48, -inf  ;;  %v229_v57 = vsel %vm207_vm0, %v205_v48, 0.0  ;;  %v1680_v63 = vld [vmem:[#allocation6 + $0x3c0] ss:$8 sps:$4 sm:$0xff]   ;;  %v1681_v0 = vld [vmem:[#allocation6 + $0x2d4] ss:$8 sps:$4 sm:$0xff]  }
  0x6e   : > { %754 = vmatprep.subr.bf16.mxu1 %v1635_v21  ;;  %v216_v58 = vrot.slane %v215_v56, 4  ;;  %v230_v59 = vrot.slane %v229_v57, 4  ;;  %v210_v60 = vmax.f32 %v208_v49, %v209_v52  ;;  %v224_v61 = vadd.f32 %v223_v53, %v222_v50  ;;  %v1683_v5 = vld [vmem:[#allocation6 + $0x3d4] ss:$8 sps:$4 sm:$0xff]   ;;  %v1685_v9 = vld [vmem:[#allocation6 + $0x2d0] ss:$8 sps:$4 sm:$0xff]  }
  0x6f   : > { %v1686_v11 = vld [vmem:[#allocation6 + $0x3d0] ss:$8 sps:$4 sm:$0xff]   ;;  %v1687_v15 = vld [vmem:[#allocation6 + $0x2e4] ss:$8 sps:$4 sm:$0xff]   ;;  %v1691_v19 = vld [vmem:[#allocation6 + $0x2e0] ss:$8 sps:$4 sm:$0xff]  }
  0x70   : > { %714 = vmatpush1.bf16.msra.mxu0 %v1637_v22  ;;  %v217_v1 = vmax.f32 %v215_v56, %v216_v58  ;;  %v231_v2 = vadd.f32 %v230_v59, %v229_v57  ;;  %v211_v3 = vrot.slane %v210_v60, 2  ;;  %v225_v4 = vrot.slane %v224_v61, 2  ;;  %v1689_v16 = vld [vmem:[#allocation6 + $0x3e4] ss:$8 sps:$4 sm:$0xff]   ;;  %v1692_v22 = vld [vmem:[#allocation6 + $0x3e0] ss:$8 sps:$4 sm:$0xff]  }
  0x71   : > { %755 = vmatpush1.bf16.msra.mxu1 %v1638_v23  ;;  %715 = vmatprep.subr.bf16.mxu0 %v1639_v24  ;;  %v1693_v23 = vld [vmem:[#allocation6 + $0x2f4] ss:$8 sps:$4 sm:$0xff]   ;;  %v2161_v48 = vld [vmem:[#allocation6 + $0x110] ss:$8 sps:$4 sm:$0xff]   ;;  %v2163_v49 = vld [vmem:[#allocation6 + $0x24] ss:$8 sps:$4 sm:$0xff]  }
  0x72   : > { %756 = vmatprep.subr.bf16.mxu1 %v1641_v25  ;;  %v218_v6 = vrot.slane %v217_v1, 2  ;;  %v232_v7 = vrot.slane %v231_v2, 2  ;;  %v226_v8 = vadd.f32 %v225_v4, %v224_v61  ;;  %v212_v10 = vmax.f32 %v210_v60, %v211_v3  ;;  %v2167_v50 = vld [vmem:[#allocation6 + $0x124] ss:$8 sps:$4 sm:$0xff]   ;;  %v2173_v52 = vld [vmem:[#allocation6 + $0x120] ss:$8 sps:$4 sm:$0xff]  }
  0x73   : > { %v2175_v53 = vld [vmem:[#allocation6 + $0x34] ss:$8 sps:$4 sm:$0xff]   ;;  %v2185_v56 = vld [vmem:[#allocation6 + $0x130] ss:$8 sps:$4 sm:$0xff]   ;;  %v2187_v57 = vld [vmem:[#allocation6 + $0x44] ss:$8 sps:$4 sm:$0xff]  }
  0x74   : > { %716 = vmatpush1.bf16.msra.mxu0 %v1643_v26  ;;  %v219_v12 = vmax.f32 %v217_v1, %v218_v6  ;;  %v233_v13 = vadd.f32 %v232_v7, %v231_v2  ;;  %v227_v14 = vrot.slane %v226_v8, 1  ;;  %v213_v20 = vrot.slane %v212_v10, 1  ;;  %v1695_v26 = vld [vmem:[#allocation6 + $0x3f4] ss:$8 sps:$4 sm:$0xff]   ;;  %v2191_v58 = vld [vmem:[#allocation6 + $0x144] ss:$8 sps:$4 sm:$0xff]  }
  0x75   : > { %757 = vmatpush1.bf16.msra.mxu1 %v1644_v27  ;;  %717 = vmatprep.subr.bf16.mxu0 %v1645_v28  ;;  %v2193_v59 = vld [vmem:[#allocation6 + $0x40] ss:$8 sps:$4 sm:$0xff]   ;;  %v2199_v61 = vld [vmem:[#allocation6 + $0x54] ss:$8 sps:$4 sm:$0xff]   ;;  %v2211_v1 = vld [vmem:[#allocation6 + $0x64] ss:$8 sps:$4 sm:$0xff]  }
  0x76   : > { %758 = vmatprep.subr.bf16.mxu1 %v1647_v29  ;;  %v220_v17 = vrot.slane %v219_v12, 1  ;;  %v234_v18 = vrot.slane %v233_v13, 1  ;;  %v228_v21 = vadd.f32 %v227_v14, %v226_v8  ;;  %v1697_v29 = vld [vmem:[#allocation6 + $0x2f0] ss:$8 sps:$4 sm:$0xff]   ;;  %v2197_v60 = vld [vmem:[#allocation6 + $0x140] ss:$8 sps:$4 sm:$0xff]  }
  0x77   : > { %v2215_v2 = vld [vmem:[#allocation6 + $0x164] ss:$8 sps:$4 sm:$0xff]   ;;  %v2219_v3 = vld [vmem:[#allocation6 + $0x60] ss:$8 sps:$4 sm:$0xff]   ;;  %v2227_v6 = vld [vmem:[#allocation6 + $0x174] ss:$8 sps:$4 sm:$0xff]  }
  0x78   : > { %718 = vmatpush1.bf16.msra.mxu0 %v1649_v30  ;;  %v221_v24 = vmax.f32 %v219_v12, %v220_v17  ;;  %v235_v25 = vadd.f32 %v234_v18, %v233_v13  ;;  %v2125_v30 = vmax.f32 %v212_v10, %v213_v20  ;;  %v2221_v4 = vld [vmem:[#allocation6 + $0x160] ss:$8 sps:$4 sm:$0xff]   ;;  %v2231_v7 = vld [vmem:[#allocation6 + $0x70] ss:$8 sps:$4 sm:$0xff]   ;;  %v2239_v10 = vld [vmem:[#allocation6 + $0x184] ss:$8 sps:$4 sm:$0xff]  }
  0x79   : > { %759 = vmatpush1.bf16.msra.mxu1 %v1650_v31  ;;  %719 = vmatprep.subr.bf16.mxu0 %v1651_v32  ;;  %v2127_v31 = vmul.f32 0.25, %v228_v21  ;;  %v1698_v32 = vld [vmem:[#allocation6 + $0x3f0] ss:$8 sps:$4 sm:$0xff]   ;;  %v2245_v12 = vld [vmem:[#allocation6 + $0x180] ss:$8 sps:$4 sm:$0xff]   ;;  %s1316_s26 = sshll.u32 %s202_s4, 4  ;;  %s2418_s26 = int_to_ptr.vmem [resolvable:$true] %s1316_s26 }
  0x7a   : > { %760 = vmatprep.subr.bf16.mxu1 %v1653_v33  ;;  %v239_v27 = vpack.c.bf16 %v221_v24, %v221_v24  ;;  %v237_v28 = vmul.f32 0.25, %v235_v25  ;;  %2488 = vst [vmem:[#allocation13_spill] sm:$0xff] %v2125_v30  ;;  %v2233_v8 = vld [vmem:[#allocation6 + $0x170] ss:$8 sps:$4 sm:$0xff]   ;;  %v2249_v13 = vld [vmem:[#allocation6 + $0x94] ss:$8 sps:$4 sm:$0xff]  }
  0x7b   : > { %2489 = vst [vmem:[#allocation14_spill] sm:$0xff] %v2127_v31  ;;  %v2251_v14 = vld [vmem:[#allocation6 + $0x194] ss:$8 sps:$4 sm:$0xff]   ;;  %v2261_v17 = vld [vmem:[#allocation6 + $0xa4] ss:$8 sps:$4 sm:$0xff]   ;;  %s1302_s8 = scalar_lea.sflag [#allocation5], %s2098_s24 }
  0x7c   : > { %720 = vmatpush1.bf16.msra.mxu0 %v1655_v34  ;;  %v241_v33 = vpack.c.bf16 %v237_v28, %v237_v28  ;;  %v2129_v34 = vld [vmem:[#allocation6 + $0x4] ss:$8 sps:$4 sm:$0xff]   ;;  %735 = vmatprep.mubr.bf16.mxu0 %v239_v27  ;;  %v2269_v20 = vld [vmem:[#allocation6 + $0x1a0] ss:$8 sps:$4 sm:$0xff]   ;;  %v2273_v21 = vld [vmem:[#allocation6 + $0xb4] ss:$8 sps:$4 sm:$0xff]  }
  0x7d   : > { %761 = vmatpush1.bf16.msra.mxu1 %v1656_v35  ;;  %721 = vmatprep.subr.bf16.mxu0 %v1657_v36  ;;  %v243_v35 = vunpack.c.l.bf16 %v239_v27  ;;  %v2131_v36 = vld [vmem:[#allocation6 + $0x104] ss:$8 sps:$4 sm:$0xff]   ;;  %s1862_s9 = scalar_lea.vmem %s2418_s26, 128  ;;  %s1938_s2 = smov [#allocation8]  }
  0x7e   : > { %762 = vmatprep.subr.bf16.mxu1 %v1659_v37  ;;  %776 = vmatprep.mubr.bf16.mxu1 %v241_v33  ;;  %v2263_v18 = vld [vmem:[#allocation6 + $0x1a4] ss:$8 sps:$4 sm:$0xff]   ;;  %p1863_p4 = scmp.ne.s32.totalorder %s2418_s26, %s1862_s9  ;;  %s1866_s10 = sshll.u32 %s1938_s2, 4  ;;  %s1867_s10 = int_to_ptr.vmem [resolvable:$false] %s1866_s10 }
  0x7f   : > { %v2133_v37 = vsub.f32 %v221_v24, %v243_v35  ;;  %v2281_v24 = vld [vmem:[#allocation6 + $0x1b0] ss:$8 sps:$4 sm:$0xff]   ;;  %v2285_v25 = vld [vmem:[#allocation6 + $0xc4] ss:$8 sps:$4 sm:$0xff]   ;;  %s1868_s11 = scalar_lea.vmem %s1867_s10, 256  ;;  %p1869_p10 = scmp.lt.s32.totalorder %s2418_s26, %s1867_s10 }
  0x80   : > { %722 = vmatpush1.bf16.msra.mxu0 %v1661_v38  ;;  %v245_v38 = vunpack.c.l.bf16 %v241_v33  ;;  %v2305_v35 = vld [vmem:[#allocation6 + $0x1d0] ss:$8 sps:$4 sm:$0xff]   ;;  %v2311_v46 = vld [vmem:[#allocation6 + $0x1e4] ss:$8 sps:$4 sm:$0xff]   ;;  %p1864_p6 = pnand %p1863_p4, %p2053_p12  ;;  %p1870_p13 = scmp.lt.s32.totalorder %s1868_s11, %s1862_s9 }
  0x81   : > { %763 = vmatpush1.bf16.msra.mxu1 %v1662_v39  ;;  %723 = vmatprep.subr.bf16.mxu0 %v1663_v40  ;;  %v2137_v39 = vpack.c.bf16 %v2125_v30, %v2125_v30  ;;  %v2141_v40 = vpack.c.bf16 %v2127_v31, %v2127_v31  ;;  %v2315_v31 = vld [vmem:[#allocation6 + $0xe0] ss:$8 sps:$4 sm:$0xff]  }
  0x82   : > { %764 = vmatprep.subr.bf16.mxu1 %v1665_v41  ;;  %v2143_v41 = vld [vmem:[#allocation6] ss:$8 sps:$4 sm:$0xff]   ;;  %2494 = vst [vmem:[#allocation19_spill] sm:$0xff] %v2315_v31  ;;  %p1865_p8 = pneg %p1864_p6  ;;  %p1871_p3 = por %p1870_p13, %p1869_p10 }
  0x83   : > { %v2317_v30 = vld [vmem:[#allocation6 + $0x1e0] ss:$8 sps:$4 sm:$0xff]  }
  0x84   : > { %724 = vmatpush1.bf16.msra.mxu0 %v1667_v42  ;;  %v2145_v42 = vld [vmem:[#allocation6 + $0x100] ss:$8 sps:$4 sm:$0xff]   ;;  %2495 = vst [vmem:[#allocation20_spill] sm:$0xff] %v2317_v30  ;;  %p1872_p7 = pnand %p1871_p3, %p1865_p8 }
  0x85   : > { %765 = vmatpush1.bf16.msra.mxu1 %v1668_v43  ;;  %725 = vmatprep.subr.bf16.mxu0 %v1669_v44  ;;  %v2147_v43 = vld [vmem:[#allocation6 + $0x14] ss:$8 sps:$4 sm:$0xff]   ;;  %v2149_v44 = vsub.f32 %v237_v28, %v245_v38  ;;  %v2293_v28 = vld [vmem:[#allocation6 + $0x1c0] ss:$8 sps:$4 sm:$0xff]   ;;  %v2309_v38 = vld [vmem:[#allocation6 + $0xe4] ss:$8 sps:$4 sm:$0xff]  }
  0x86   : > { %766 = vmatprep.subr.bf16.mxu1 %v1671_v45  ;;  %v2153_v45 = vld [vmem:[#allocation6 + $0x114] ss:$8 sps:$4 sm:$0xff]   ;;  %2490 = vst [vmem:[#allocation15_spill] sm:$0xff] %v2293_v28 }
  0x88   : > { %726 = vmatpush1.bf16.msra.mxu0 %v1673_v47  ;;  %v2157_v47 = vld [vmem:[#allocation6 + $0x10] ss:$8 sps:$4 sm:$0xff]  }
  0x89   : > { %767 = vmatpush1.bf16.msra.mxu1 %v1674_v51  ;;  %727 = vmatprep.subr.bf16.mxu0 %v1675_v54  ;;  %v2169_v51 = vld [vmem:[#allocation6 + $0x20] ss:$8 sps:$4 sm:$0xff]   ;;  %v2179_v54 = vld [vmem:[#allocation6 + $0x134] ss:$8 sps:$4 sm:$0xff]  }
  0x8a   : > { %768 = vmatprep.subr.bf16.mxu1 %v1677_v55  ;;  %v2181_v55 = vld [vmem:[#allocation6 + $0x30] ss:$8 sps:$4 sm:$0xff]  }
  0x8c   : > { %728 = vmatpush1.bf16.msra.mxu0 %v1679_v62  ;;  %v2203_v62 = vld [vmem:[#allocation6 + $0x154] ss:$8 sps:$4 sm:$0xff]  }
  0x8d   : > { %769 = vmatpush1.bf16.msra.mxu1 %v1680_v63  ;;  %729 = vmatprep.subr.bf16.mxu0 %v1681_v0  ;;  %v2205_v63 = vld [vmem:[#allocation6 + $0x50] ss:$8 sps:$4 sm:$0xff]  }
  0x8e   : > { %770 = vmatprep.subr.bf16.mxu1 %v1683_v5  ;;  %v2209_v0 = vld [vmem:[#allocation6 + $0x150] ss:$8 sps:$4 sm:$0xff]   ;;  %v2225_v5 = vld [vmem:[#allocation6 + $0x74] ss:$8 sps:$4 sm:$0xff]  }
  0x90   : > { %730 = vmatpush1.bf16.msra.mxu0 %v1685_v9  ;;  %v2237_v9 = vld [vmem:[#allocation6 + $0x84] ss:$8 sps:$4 sm:$0xff]  }
  0x91   : > { %771 = vmatpush1.bf16.msra.mxu1 %v1686_v11  ;;  %731 = vmatprep.subr.bf16.mxu0 %v1687_v15  ;;  %v2243_v11 = vld [vmem:[#allocation6 + $0x80] ss:$8 sps:$4 sm:$0xff]   ;;  %v2255_v15 = vld [vmem:[#allocation6 + $0x90] ss:$8 sps:$4 sm:$0xff]  }
  0x92   : > { %772 = vmatprep.subr.bf16.mxu1 %v1689_v16  ;;  %v2257_v16 = vld [vmem:[#allocation6 + $0x190] ss:$8 sps:$4 sm:$0xff]  }
  0x94   : > { %732 = vmatpush1.bf16.msra.mxu0 %v1691_v19  ;;  %v2267_v19 = vld [vmem:[#allocation6 + $0xa0] ss:$8 sps:$4 sm:$0xff]  }
  0x95   : > { %773 = vmatpush1.bf16.msra.mxu1 %v1692_v22  ;;  %733 = vmatprep.subr.bf16.mxu0 %v1693_v23  ;;  %v2275_v22 = vld [vmem:[#allocation6 + $0x1b4] ss:$8 sps:$4 sm:$0xff]   ;;  %v2279_v23 = vld [vmem:[#allocation6 + $0xb0] ss:$8 sps:$4 sm:$0xff]  }
  0x96   : > { %774 = vmatprep.subr.bf16.mxu1 %v1695_v26  ;;  %v2287_v26 = vld [vmem:[#allocation6 + $0x1c4] ss:$8 sps:$4 sm:$0xff]  }
  0x98   : > { %734 = vmatpush1.bf16.msra.mxu0 %v1697_v29  ;;  %v2297_v29 = vld [vmem:[#allocation6 + $0xd4] ss:$8 sps:$4 sm:$0xff]  }
  0x99   : > { %775 = vmatpush1.bf16.msra.mxu1 %v1698_v32  ;;  %1105 = vmatprep.subr.bf16.mxu0 %v2129_v34  ;;  %2491 = vst [vmem:[#allocation16_spill] sm:$0xff] %v2297_v29  ;;  %v2299_v32 = vld [vmem:[#allocation6 + $0x1d4] ss:$8 sps:$4 sm:$0xff]  }
  0x9a   : > { %1146 = vmatprep.subr.bf16.mxu1 %v2131_v36  ;;  %2492 = vst [vmem:[#allocation17_spill] sm:$0xff] %v2299_v32 }
  0x9b   : > { %736 = vmatmul.mubr.bf16.vlgmr.msra.gmra.mrb[0].mxu0 %v2137_v39 }
  0x9c   : > { %777 = vmatmul.mubr.bf16.vlgmr.msra.gmra.mrb[0].mxu1 %v2141_v40  ;;  %1106 = vmatpush1.bf16.msra.mxu0 %v2143_v41 }
  0x9d   : > { %1147 = vmatpush1.bf16.msra.mxu1 %v2145_v42  ;;  %1107 = vmatprep.subr.bf16.mxu0 %v2147_v43 }
  0x9e   : > { %1148 = vmatprep.subr.bf16.mxu1 %v2153_v45  ;;  %1137 = vmatprep.mubr.bf16.mxu0 %v239_v27  ;;  %v2291_v27 = vld [vmem:[#allocation6 + $0xc0] ss:$8 sps:$4 sm:$0xff]  }
  0x9f   : > { %1178 = vmatprep.mubr.bf16.mxu1 %v241_v33  ;;  %v2303_v33 = vld [vmem:[#allocation6 + $0xd0] ss:$8 sps:$4 sm:$0xff]  }
  0xa0   : > { %1108 = vmatpush1.bf16.msra.mxu0 %v2157_v47  ;;  %2493 = vst [vmem:[#allocation18_spill] sm:$0xff] %v2303_v33 }
  0xa1   : > { %1149 = vmatpush1.bf16.msra.mxu1 %v2161_v48  ;;  %1109 = vmatprep.subr.bf16.mxu0 %v2163_v49 }
  0xa2   : > { %1150 = vmatprep.subr.bf16.mxu1 %v2167_v50 }
  0xa4   : > { %1110 = vmatpush1.bf16.msra.mxu0 %v2169_v51 }
  0xa5   : > { %1151 = vmatpush1.bf16.msra.mxu1 %v2173_v52  ;;  %1111 = vmatprep.subr.bf16.mxu0 %v2175_v53 }
  0xa6   : > { %1152 = vmatprep.subr.bf16.mxu1 %v2179_v54 }
  0xa8   : > { %1112 = vmatpush1.bf16.msra.mxu0 %v2181_v55 }
  0xa9   : > { %1153 = vmatpush1.bf16.msra.mxu1 %v2185_v56  ;;  %1113 = vmatprep.subr.bf16.mxu0 %v2187_v57 }
  0xaa   : > { %1154 = vmatprep.subr.bf16.mxu1 %v2191_v58 }
  0xac   : > { %1114 = vmatpush1.bf16.msra.mxu0 %v2193_v59 }
  0xad   : > { %1155 = vmatpush1.bf16.msra.mxu1 %v2197_v60  ;;  %1115 = vmatprep.subr.bf16.mxu0 %v2199_v61 }
  0xae   : > { %1156 = vmatprep.subr.bf16.mxu1 %v2203_v62 }
  0xb0   : > { %1116 = vmatpush1.bf16.msra.mxu0 %v2205_v63 }
  0xb1   : > { %1157 = vmatpush1.bf16.msra.mxu1 %v2209_v0  ;;  %1117 = vmatprep.subr.bf16.mxu0 %v2211_v1 }
  0xb2   : > { %1158 = vmatprep.subr.bf16.mxu1 %v2215_v2 }
  0xb4   : > { %1118 = vmatpush1.bf16.msra.mxu0 %v2219_v3 }
  0xb5   : > { %1159 = vmatpush1.bf16.msra.mxu1 %v2221_v4  ;;  %1119 = vmatprep.subr.bf16.mxu0 %v2225_v5 }
  0xb6   : > { %1160 = vmatprep.subr.bf16.mxu1 %v2227_v6 }
  0xb8   : > { %1120 = vmatpush1.bf16.msra.mxu0 %v2231_v7 }
  0xb9   : > { %1161 = vmatpush1.bf16.msra.mxu1 %v2233_v8  ;;  %1121 = vmatprep.subr.bf16.mxu0 %v2237_v9 }
  0xba   : > { %1162 = vmatprep.subr.bf16.mxu1 %v2239_v10 }
  0xbc   : > { %1122 = vmatpush1.bf16.msra.mxu0 %v2243_v11 }
  0xbd   : > { %1163 = vmatpush1.bf16.msra.mxu1 %v2245_v12  ;;  %1123 = vmatprep.subr.bf16.mxu0 %v2249_v13 }
  0xbe   : > { %1164 = vmatprep.subr.bf16.mxu1 %v2251_v14 }
  0xc0   : > { %1124 = vmatpush1.bf16.msra.mxu0 %v2255_v15 }
  0xc1   : > { %1165 = vmatpush1.bf16.msra.mxu1 %v2257_v16  ;;  %1125 = vmatprep.subr.bf16.mxu0 %v2261_v17 }
  0xc2   : > { %1166 = vmatprep.subr.bf16.mxu1 %v2263_v18 }
  0xc4   : > { %1126 = vmatpush1.bf16.msra.mxu0 %v2267_v19 }
  0xc5   : > { %1167 = vmatpush1.bf16.msra.mxu1 %v2269_v20  ;;  %1127 = vmatprep.subr.bf16.mxu0 %v2273_v21 }
  0xc6   : > { %1168 = vmatprep.subr.bf16.mxu1 %v2275_v22 }
  0xc8   : > { %1128 = vmatpush1.bf16.msra.mxu0 %v2279_v23 }
  0xc9   : > { %1169 = vmatpush1.bf16.msra.mxu1 %v2281_v24  ;;  %1129 = vmatprep.subr.bf16.mxu0 %v2285_v25 }
  0xca   : > { %1170 = vmatprep.subr.bf16.mxu1 %v2287_v26 }
  0xcc   : > { %1130 = vmatpush1.bf16.msra.mxu0 %v2291_v27 }
  0xcd   : > { %1171 = vmatpush1.bf16.msra.mxu1 %v2293_v28  ;;  %1131 = vmatprep.subr.bf16.mxu0 %v2297_v29  ;;  %v2321_v28 = vld [vmem:[#allocation6 + $0xf4] ss:$8 sps:$4 sm:$0xff]  }
  0xce   : > { %1172 = vmatprep.subr.bf16.mxu1 %v2299_v32  ;;  %v2323_v29 = vld [vmem:[#allocation6 + $0x1f4] ss:$8 sps:$4 sm:$0xff]   ;;  %v2327_v32 = vld [vmem:[#allocation6 + $0xf0] ss:$8 sps:$4 sm:$0xff]  }
  0xd0   : > { %1132 = vmatpush1.bf16.msra.mxu0 %v2303_v33  ;;  %v2329_v33 = vld [vmem:[#allocation6 + $0x1f0] ss:$8 sps:$4 sm:$0xff]  }
  0xd1   : > { %1173 = vmatpush1.bf16.msra.mxu1 %v2305_v35  ;;  %1133 = vmatprep.subr.bf16.mxu0 %v2309_v38 }
  0xd2   : > { %1174 = vmatprep.subr.bf16.mxu1 %v2311_v46 }
  0xd4   : > { %1134 = vmatpush1.bf16.msra.mxu0 %v2315_v31  ;;  %v251_v31 = vpack.c.bf16 %v2133_v37, %v2133_v37  ;;  %v244_v37 = vunpack.c.l.bf16 %v2141_v40 }
  0xd5   : > { %1175 = vmatpush1.bf16.msra.mxu1 %v2317_v30  ;;  %1135 = vmatprep.subr.bf16.mxu0 %v2321_v28  ;;  %v253_v30 = vpack.c.bf16 %v2149_v44, %v2149_v44  ;;  %v2501_v44 = vld [vmem:[#allocation14_spill] sm:$0xff] }
  0xd6   : > { %1176 = vmatprep.subr.bf16.mxu1 %v2323_v29 }
  0xd8   : > { %1136 = vmatpush1.bf16.msra.mxu0 %v2327_v32 }
  0xd9   : > { %1177 = vmatpush1.bf16.msra.mxu1 %v2329_v33  ;;  %1187 = vmatprep.subr.bf16.mxu0 %v2129_v34  ;;  %v2498_v34 = vld [vmem:[#allocation17_spill] sm:$0xff] }
  0xda   : > { %1228 = vmatprep.subr.bf16.mxu1 %v2131_v36  ;;  %v242_v36 = vunpack.c.l.bf16 %v2137_v39 }
  0xdb   : > { %1138 = vmatmul.mubr.bf16.vlgmr.msra.gmra.mrb[4].mxu0 %v2137_v39 }
  0xdc   : > { %1179 = vmatmul.mubr.bf16.vlgmr.msra.gmra.mrb[4].mxu1 %v2141_v40  ;;  %1188 = vmatpush1.bf16.msra.mxu0 %v2143_v41  ;;  %v2499_v41 = vld [vmem:[#allocation18_spill] sm:$0xff] }
  0xdd   : > { %1229 = vmatpush1.bf16.msra.mxu1 %v2145_v42  ;;  %1189 = vmatprep.subr.bf16.mxu0 %v2147_v43  ;;  %v2500_v42 = vld [vmem:[#allocation13_spill] sm:$0xff] }
  0xde   : > { %1230 = vmatprep.subr.bf16.mxu1 %v2153_v45  ;;  %1219 = vmatprep.mubr.bf16.mxu0 %v251_v31  ;;  %v2497_v31 = vld [vmem:[#allocation16_spill] sm:$0xff]  ;;  %v246_v43 = vsub.f32 %v2500_v42, %v242_v36  ;;  %v248_v45 = vsub.f32 %v2501_v44, %v244_v37 }
  0xdf   : > { %1260 = vmatprep.mubr.bf16.mxu1 %v253_v30  ;;  %v2496_v30 = vld [vmem:[#allocation15_spill] sm:$0xff] }
  0xe0   : > { %1190 = vmatpush1.bf16.msra.mxu0 %v2157_v47  ;;  %v2502_v47 = vld [vmem:[#allocation19_spill] sm:$0xff]  ;;  %v250_v39 = vpack.c.bf16 %v246_v43, %v246_v43  ;;  %v252_v40 = vpack.c.bf16 %v248_v45, %v248_v45 }
  0xe1   : > { %1231 = vmatpush1.bf16.msra.mxu1 %v2161_v48  ;;  %1191 = vmatprep.subr.bf16.mxu0 %v2163_v49  ;;  %v2503_v48 = vld [vmem:[#allocation20_spill] sm:$0xff] }
  0xe2   : > { %1232 = vmatprep.subr.bf16.mxu1 %v2167_v50 }
  0xe4   : > { %1192 = vmatpush1.bf16.msra.mxu0 %v2169_v51 }
  0xe5   : > { %1233 = vmatpush1.bf16.msra.mxu1 %v2173_v52  ;;  %1193 = vmatprep.subr.bf16.mxu0 %v2175_v53 }
  0xe6   : > { %1234 = vmatprep.subr.bf16.mxu1 %v2179_v54 }
  0xe8   : > { %1194 = vmatpush1.bf16.msra.mxu0 %v2181_v55 }
  0xe9   : > { %1235 = vmatpush1.bf16.msra.mxu1 %v2185_v56  ;;  %1195 = vmatprep.subr.bf16.mxu0 %v2187_v57 }
  0xea   : > { %1236 = vmatprep.subr.bf16.mxu1 %v2191_v58 }
  0xec   : > { %1196 = vmatpush1.bf16.msra.mxu0 %v2193_v59 }
  0xed   : > { %1237 = vmatpush1.bf16.msra.mxu1 %v2197_v60  ;;  %1197 = vmatprep.subr.bf16.mxu0 %v2199_v61 }
  0xee   : > { %1238 = vmatprep.subr.bf16.mxu1 %v2203_v62 }
  0xf0   : > { %1198 = vmatpush1.bf16.msra.mxu0 %v2205_v63 }
  0xf1   : > { %1239 = vmatpush1.bf16.msra.mxu1 %v2209_v0  ;;  %1199 = vmatprep.subr.bf16.mxu0 %v2211_v1 }
  0xf2   : > { %1240 = vmatprep.subr.bf16.mxu1 %v2215_v2 }
  0xf4   : > { %1200 = vmatpush1.bf16.msra.mxu0 %v2219_v3 }
  0xf5   : > { %1241 = vmatpush1.bf16.msra.mxu1 %v2221_v4  ;;  %1201 = vmatprep.subr.bf16.mxu0 %v2225_v5 }
  0xf6   : > { %1242 = vmatprep.subr.bf16.mxu1 %v2227_v6 }
  0xf8   : > { %1202 = vmatpush1.bf16.msra.mxu0 %v2231_v7 }
  0xf9   : > { %1243 = vmatpush1.bf16.msra.mxu1 %v2233_v8  ;;  %1203 = vmatprep.subr.bf16.mxu0 %v2237_v9 }
  0xfa   : > { %1244 = vmatprep.subr.bf16.mxu1 %v2239_v10 }
  0xfc   : > { %1204 = vmatpush1.bf16.msra.mxu0 %v2243_v11  ;;  %v1272_v11 = vstv %s1271_s19 }
  0xfd   : > { %1245 = vmatpush1.bf16.msra.mxu1 %v2245_v12  ;;  %1205 = vmatprep.subr.bf16.mxu0 %v2249_v13 }
  0xfe   : > { %1246 = vmatprep.subr.bf16.mxu1 %v2251_v14 }
 0x100   : > { %1206 = vmatpush1.bf16.msra.mxu0 %v2255_v15 }
 0x101   : > { %1247 = vmatpush1.bf16.msra.mxu1 %v2257_v16  ;;  %1207 = vmatprep.subr.bf16.mxu0 %v2261_v17 }
 0x102   : > { %1248 = vmatprep.subr.bf16.mxu1 %v2263_v18 }
 0x104   : > { %1208 = vmatpush1.bf16.msra.mxu0 %v2267_v19 }
 0x105   : > { %1249 = vmatpush1.bf16.msra.mxu1 %v2269_v20  ;;  %1209 = vmatprep.subr.bf16.mxu0 %v2273_v21 }
 0x106   : > { %1250 = vmatprep.subr.bf16.mxu1 %v2275_v22 }
 0x108   : > { %1210 = vmatpush1.bf16.msra.mxu0 %v2279_v23 }
 0x109   : > { %1251 = vmatpush1.bf16.msra.mxu1 %v2281_v24  ;;  %1211 = vmatprep.subr.bf16.mxu0 %v2285_v25 }
 0x10a   : > { %1252 = vmatprep.subr.bf16.mxu1 %v2287_v26 }
 0x10c   : > { %1212 = vmatpush1.bf16.msra.mxu0 %v2291_v27  ;;  %v1287_v27 = vlaneseq }
 0x10d   : > { %1253 = vmatpush1.bf16.msra.mxu1 %v2496_v30  ;;  %1213 = vmatprep.subr.bf16.mxu0 %v2497_v31  ;;  %v2504_v31 = vld [vmem:[#allocation12_spill] sm:$0xff] }
 0x10e   : > { %1254 = vmatprep.subr.bf16.mxu1 %v2498_v34 }
 0x110   : > { %1214 = vmatpush1.bf16.msra.mxu0 %v2499_v41 }
 0x111   : > { %1255 = vmatpush1.bf16.msra.mxu1 %v2305_v35  ;;  %1215 = vmatprep.subr.bf16.mxu0 %v2309_v38 }
 0x112   : > { %1256 = vmatprep.subr.bf16.mxu1 %v2311_v46 }
 0x114   : > { %1216 = vmatpush1.bf16.msra.mxu0 %v2502_v47 }
 0x115   : > { %1257 = vmatpush1.bf16.msra.mxu1 %v2503_v48  ;;  %1217 = vmatprep.subr.bf16.mxu0 %v2321_v28  ;;  %v1288_v28 = vshrl.u32 %v1287_v27, 7 }
 0x116   : > { %1258 = vmatprep.subr.bf16.mxu1 %v2323_v29 }
 0x117   : > { %v1289_v29 = vsub.s32 0, %v1288_v28 }
 0x118   : > { %1218 = vmatpush1.bf16.msra.mxu0 %v2327_v32 }
 0x119   : > { %1259 = vmatpush1.bf16.msra.mxu1 %v2329_v33 }
 0x11b   : > { %1220 = vmatmul.mubr.bf16.vlgmr.msra.gmra.mrb[8].mxu0 %v250_v39 }
 0x11c   : > { %1261 = vmatmul.mubr.bf16.vlgmr.msra.gmra.mrb[8].mxu1 %v252_v40 }
 0x16e   : > { %v737_v46 = vpop.f32.mrb[0].mxu0 }
 0x16f   : > { %v778_v49 = vpop.f32.mrb[0].mxu1  ;;  %v739_v51 = vpop.f32.mrb[1].mxu0 }
 0x170   : > { %v779_v50 = vadd.f32 %v778_v49, %v737_v46  ;;  %v780_v52 = vpop.f32.mrb[1].mxu1  ;;  %v741_v54 = vpop.f32.mrb[2].mxu0 }
 0x171   : > { %v781_v53 = vadd.f32 %v780_v52, %v739_v51  ;;  %v782_v55 = vpop.f32.mrb[2].mxu1  ;;  %v742_v56 = vpop.f32.mrb[3].mxu0 }
 0x172   : > { %v783_v57 = vpop.f32.mrb[3].mxu1 }
 0x1ae   : > { %v1139_v58 = vpop.f32.mrb[4].mxu0 }
 0x1af   : > { %v1180_v59 = vpop.f32.mrb[4].mxu1  ;;  %v1140_v60 = vadd.f32 %v1139_v58, %v779_v50  ;;  %v1141_v61 = vpop.f32.mrb[5].mxu0 }
 0x1b0   : > { %v1182_v62 = vpop.f32.mrb[5].mxu1  ;;  %v1142_v63 = vadd.f32 %v1141_v61, %v781_v53  ;;  %v1143_v0 = vpop.f32.mrb[6].mxu0 }
 0x1b1   : > { %v1184_v1 = vpop.f32.mrb[6].mxu1  ;;  %v1181_v2 = vadd.f32 %v1180_v59, %v1140_v60  ;;  %v1144_v3 = vpop.f32.mrb[7].mxu0 }
 0x1b2   : > { %v1185_v4 = vpop.f32.mrb[7].mxu1  ;;  %v1183_v5 = vadd.f32 %v1182_v62, %v1142_v63 }
 0x1ee   : > { %v1221_v6 = vpop.f32.mrb[8].mxu0 }
 0x1ef   : > { %v1262_v7 = vpop.f32.mrb[8].mxu1  ;;  %v1223_v9 = vpop.f32.mrb[9].mxu0 }
 0x1f0   : > { %v1263_v8 = vadd.f32 %v1262_v7, %v1221_v6  ;;  %v1264_v10 = vpop.f32.mrb[9].mxu1  ;;  %v1225_v13 = vpop.f32.mrb[10].mxu0 }
 0x1f1   : > { %v1265_v12 = vadd.f32 %v1264_v10, %v1223_v9  ;;  %v1266_v14 = vpop.f32.mrb[10].mxu1  ;;  %v1226_v16 = vpop.f32.mrb[11].mxu0 }
 0x1f2   : > { %v1269_v15 = vadd.f32 %v1263_v8, %v1181_v2  ;;  %v1267_v17 = vpop.f32.mrb[11].mxu1 }
 0x1f3   : > { %v1270_v18 = vadd.f32 %v1265_v12, %v1183_v5 }
 0x1f4   : > { %v1273_v19 = vadd.f32 %v1272_v11, %v1269_v15 }
 0x1f5   : > { %v1274_v20 = vadd.f32 %v1272_v11, %v1270_v18 }
 0x1f6   : > { %v1535_v21 = vmul.f32 -1.442695, %v1273_v19 }
 0x1f7   : > { %v1536_v22 = vmul.f32 -1.442695, %v1274_v20 }
 0x1f8   : > { %1796 = vpow2.f32 %v1535_v21 }
 0x1f9   : > { %1798 = vpow2.f32 %v1536_v22 }
 0x202   : > { %v1797_v23 = vpop.eup %1796 }
 0x203   : > { %v1799_v24 = vpop.eup %1798  ;;  %v1281_v25 = vadd.f32 1.0, %v1797_v23 }
 0x204   : > { %v1282_v26 = vadd.f32 1.0, %v1799_v24 }
 0x205   : > { %1800 = vrcp.f32 %v1281_v25 }
 0x206   : > { %1802 = vrcp.f32 %v1282_v26 }
 0x20f   : > { %v1801_v32 = vpop.eup %1800 }
 0x210   : > { %v1803_v33 = vpop.eup %1802  ;;  %v1290_v35 = vrot.slane %v1801_v32, %v1289_v29 }
 0x211   : > { %v1294_v38 = vrot.slane %v1803_v33, %v1289_v29 }
 0x213   : > { %v1297_v30 = vcombine.low %v1290_v35, %v1294_v38 }
 0x215   : > { %v1299_v34 = vmul.f32 %v1297_v30, %v2504_v31 }
 0x217   : > { %1300 = vst [vmem:[%s202_s4] sm:$0xff] %v1299_v34 }
 0x218   : > { %1875 = shalt.err (!%p1872_p7)
}
 0x219   : > { %s1876_s12 = scalar_lea.hbm %s2416_s7, 128  ;;  %s1880_s29 = scalar_lea.hbm %s2463_s3, 256 }
 0x21a   : > { %p1877_p9 = scmp.ne.s32.totalorder %s2416_s7, %s1876_s12  ;;  %p1881_p0 = scmp.lt.u32.totalorder %s2416_s7, %s2463_s3 }
 0x21b   : > { %p1882_p11 = scmp.lt.u32.totalorder %s1880_s29, %s1876_s12  ;;  %p1884_p4 = scmp.lt.u32.totalorder %s1876_s12, %s2416_s7 }
 0x21c   : > { %p1878_p2 = pnand %p1877_p9, %p2053_p12 }
 0x21d   : > { %p1883_p1 = por %p1882_p11, %p1881_p0 }
 0x21e   : > { %p1879_p5 = pneg %p1878_p2 }
 0x21f   : > { %p1885_p6 = por %p1884_p4, %p1883_p1 }
 0x221   : > { %p1886_p8 = pnand %p1885_p6, %p1879_p5 }
 0x223   : > { %1889 = shalt.err (!%p1886_p8)
}
 0x224   : > { %1550 = dma.vmem_to_hbm [thread:$0]  (%p2053_p12), %s2418_s26, 128, %s2416_s7, %s1302_s8  }
 0x225 PF: > { %s1328_s23 = sand.u32 1, %s1920_s14   ;;  %p2505_p10 = scmp.ne.s32.totalorder %s2477_s20, 0 }
 0x226   : > { %p2506_p13 = scmp.ge.s32.totalorder %s1932_s17, 2  ;;  %s1329_s6 = scalar_lea.sflag [#allocation5], %s1328_s23 }
 0x228   : > { %p1561_p3 = pnand %p2506_p13, %p2505_p10 }
 0x22a   : > { %1915 = dma.done.wait (!%p1561_p3), %s1329_s6, 128  }
 0x22b   : > { %1917 = vsyncadd (!%p1561_p3), %s1329_s6, 4294967168  ;;  %p18_p7 = scmp.ge.s32.totalorder %s2018_s25, 4   ;;  %s2507_s14 = smov %s1924_s15 }
 0x22c   : > { %s2508_s15 = smov %s1928_s16  ;;  %s2509_s16 = smov %s2049_s13 }
 0x22d   : > { %s2510_s17 = smov %s2018_s25  ;;  %20 = sbr.rel (!%p18_p7) target bundleno = 8 (0x8), region = 82 }
 0x234   :  { %1334 = vsyncpa [#allocation4], 1 }
 0x235   :  { %1336 = vsyncpa [#allocation4 + $0x1], 1 }
 0x236   :  { %1337 = vsyncpa [#allocation7], 1 }
 0x237   :  { %1338 = vsyncpa [#allocation5], 1 }
 0x238   :  { %1340 = vsyncpa [#allocation5 + $0x1], 1 }

</bundles_post_ra>
